<compile_context>
chip_gen: v7x
topology: tpu7x:2x2x1
jax: 0.10.0
libtpu: 0.0.40
codegen_flags: <defaults>
</compile_context>

<pallas_src>
import jax
import jax.numpy as jnp
from jax.experimental import pallas as pl
from jax.experimental.pallas import tpu as pltpu


def _round_up(n, m):
    return ((n + m - 1) // m) * m


def valuenet_kernel(xt_ref, w1_ref, b1_ref, w2_ref, b2_ref, w3_ref, b3_ref, o_ref):
    # x tile arrives f32 (S, TB); cast to bf16 in-kernel (free under the DMA).
    xt = xt_ref[...].astype(jnp.bfloat16)
    # fc1 + ReLU: (H, S) . (S, TB) -> (H, TB); bias broadcast along lanes.
    h1 = jnp.dot(w1_ref[...], xt, preferred_element_type=jnp.float32)
    h1 = jnp.maximum(h1 + b1_ref[...], 0.0)
    # fc2 + ReLU: (H, H) . (H, TB) -> (H, TB).
    h2 = jnp.dot(w2_ref[...], h1.astype(jnp.bfloat16),
                 preferred_element_type=jnp.float32)
    h2 = jnp.maximum(h2 + b2_ref[...], 0.0)
    # fc3: (1, H) . (H, TB) -> (1, TB), lane-dense output store.
    out = jnp.dot(w3_ref[...], h2.astype(jnp.bfloat16),
                  preferred_element_type=jnp.float32)
    o_ref[...] = (out + b3_ref[...]).astype(o_ref.dtype)


def value_net_forward(x, params, *, block_b=8192):
    """x: [B, state_dim] f32.  params: w1,b1,w2,b2,w3,b3 with w as [in, out]."""
    B, S = x.shape
    H = params["w1"].shape[1]

    # Batch tile: lane-aligned (128); large by default since the kernel is
    # per-grid-step-overhead bound, not VMEM bound, at these feature sizes.
    tb = _round_up(min(block_b, max(B, 128)), 128)
    # v7x has two TensorCores; under dimension_semantics=("parallel",) a
    # single huge tile leaves one core idle, so split non-tiny batches.
    if B > 512 and pl.cdiv(B, tb) < 2:
        tb = _round_up(pl.cdiv(B, 2), 128)
    num_tiles = pl.cdiv(B, tb)
    b_pad = num_tiles * tb

    # Transposed x: (S, B) so the x tile's last dim (batch) sits on lanes.
    # No padding -- the ragged last tile reads undefined columns past B,
    # which is safe because each output column depends only on its own input
    # column and we slice [:B] below.
    xt = x.T

    # Weights in (out, in) layout for W.x; bf16 operands for the MXU.
    w1 = params["w1"].T.astype(jnp.bfloat16)            # (H, S)
    w2 = params["w2"].T.astype(jnp.bfloat16)            # (H, H)
    w3 = params["w3"].T.astype(jnp.bfloat16)            # (1, H)
    b1 = params["b1"].reshape(H, 1).astype(jnp.float32)
    b2 = params["b2"].reshape(H, 1).astype(jnp.float32)
    b3 = params["b3"].reshape(1, 1).astype(jnp.float32)

    # Constant index_maps keep weights/biases VMEM-resident across the grid.
    const = lambda shape: pl.BlockSpec(shape, lambda i: (0,) * len(shape))

    if num_tiles >= 3:
        # Per-step compute is only a few us; a 3-deep x buffer (S*tb*4 B each)
        # hides the DMA issue latency.
        x_spec = pl.BlockSpec((S, tb), lambda i: (0, i),
                              pipeline_mode=pl.Buffered(3))
    else:
        x_spec = pl.BlockSpec((S, tb), lambda i: (0, i))

    flops = 2 * b_pad * (S * H + H * H + H)
    bytes_accessed = (b_pad * S * 4                         # x tiles (f32 in)
                      + (w1.size + w2.size + w3.size) * 2   # bf16 weights, once
                      + (b1.size + b2.size + b3.size) * 4   # f32 biases, once
                      + b_pad * 4)                          # output slab

    out = pl.pallas_call(
        valuenet_kernel,
        out_shape=jax.ShapeDtypeStruct((1, b_pad), jnp.float32),
        grid=(num_tiles,),
        in_specs=[
            x_spec,                                    # x: streamed per batch tile
            const(w1.shape), const(b1.shape),          # weights/biases: resident
            const(w2.shape), const(b2.shape),
            const(w3.shape), const(b3.shape),
        ],
        out_specs=pl.BlockSpec((1, tb), lambda i: (0, i)),   # lane-dense slab
        compiler_params=pltpu.CompilerParams(
            dimension_semantics=("parallel",)),
        cost_estimate=pl.CostEstimate(
            flops=flops, transcendentals=0, bytes_accessed=bytes_accessed),
    )(xt, w1, b1, w2, b2, w3, b3)

    return out[0, :B].reshape(B, 1)


def init_params(key, state_dim, hidden_dim):
    """Deterministic init mimicking PyTorch nn.Linear (uniform +-1/sqrt(fan_in))."""
    ks = jax.random.split(key, 6)

    def linear(kw, kb, fan_in, fan_out):
        bound = 1.0 / jnp.sqrt(jnp.float32(fan_in))
        w = jax.random.uniform(kw, (fan_in, fan_out), jnp.float32, -bound, bound)
        b = jax.random.uniform(kb, (1, fan_out), jnp.float32, -bound, bound)
        return w, b

    w1, b1 = linear(ks[0], ks[1], state_dim, hidden_dim)
    w2, b2 = linear(ks[2], ks[3], hidden_dim, hidden_dim)
    w3, b3 = linear(ks[4], ks[5], hidden_dim, 1)
    return {"w1": w1, "b1": b1, "w2": w2, "b2": b2, "w3": w3, "b3": b3}


def value_net_ref(x, p, *, matmul_dtype=jnp.float32):
    """Pure-JAX reference; matmul_dtype=bfloat16 matches the kernel's math."""
    w1 = p["w1"].astype(matmul_dtype)
    w2 = p["w2"].astype(matmul_dtype)
    w3 = p["w3"].astype(matmul_dtype)
    h1 = jnp.maximum(
        jnp.dot(x.astype(matmul_dtype), w1, preferred_element_type=jnp.float32)
        + p["b1"], 0.0)
    h2 = jnp.maximum(
        jnp.dot(h1.astype(matmul_dtype), w2, preferred_element_type=jnp.float32)
        + p["b2"], 0.0)
    return jnp.dot(h2.astype(matmul_dtype), w3,
                   preferred_element_type=jnp.float32) + p["b3"]


if __name__ == "__main__":
    state_dim, hidden_dim = 4, 32

    key = jax.random.PRNGKey(0)
    k_params, k_x1, k_x2, k_x3 = jax.random.split(key, 4)
    params = init_params(k_params, state_dim, hidden_dim)

    # Cases: tiny single-tile batch; a batch split into 2 tiles (v7x 2-TC path
    # with a ragged second tile); and a 4-tile grid (exercises pl.Buffered(3)
    # deep pipelining plus the ragged last tile).
    cases = (
        (8, k_x1, {}),
        (1000, k_x2, {}),
        (1000, k_x3, {"block_b": 256}),
    )
    for batch, kx, kwargs in cases:
        x = jax.random.normal(kx, (batch, state_dim), jnp.float32)
        out = jax.block_until_ready(value_net_forward(x, params, **kwargs))
        ref = value_net_ref(x, params, matmul_dtype=jnp.bfloat16)
        assert out.shape == (batch, 1), out.shape
        err = float(jnp.max(jnp.abs(out - ref)))
        assert jnp.allclose(out, ref, atol=1e-3, rtol=1e-3), err

    print("KERNEL_OK")
</pallas_src>

<mosaic_0001>
module attributes {stable_mosaic.version = 11 : i64} {
  func.func @valuenet_kernel(%arg0: i32, %arg1: memref<4x128xf32, #tpu.memory_space<vmem>>, %arg2: memref<32x4xbf16, #tpu.memory_space<vmem>>, %arg3: memref<32x1xf32, #tpu.memory_space<vmem>>, %arg4: memref<32x32xbf16, #tpu.memory_space<vmem>>, %arg5: memref<32x1xf32, #tpu.memory_space<vmem>>, %arg6: memref<1x32xbf16, #tpu.memory_space<vmem>>, %arg7: memref<1x1xf32, #tpu.memory_space<vmem>>, %arg8: memref<1x128xf32, #tpu.memory_space<vmem>>) attributes {dimension_semantics = [#tpu.dimension_semantics<parallel>], iteration_bounds = array<i64: 1>, scalar_prefetch = 0 : i64, scratch_operands = 0 : i64, tpu.core_type = #tpu.core_type<tc>, window_params = [{transform_indices = @transform_0, window_bounds = array<i64: 4, 128>}, {pipeline_mode = #tpu.pipeline_mode<synchronous>, transform_indices = @transform_1, window_bounds = array<i64: 32, 4>}, {pipeline_mode = #tpu.pipeline_mode<synchronous>, transform_indices = @transform_2, window_bounds = array<i64: 32, 1>}, {pipeline_mode = #tpu.pipeline_mode<synchronous>, transform_indices = @transform_3, window_bounds = array<i64: 32, 32>}, {pipeline_mode = #tpu.pipeline_mode<synchronous>, transform_indices = @transform_4, window_bounds = array<i64: 32, 1>}, {pipeline_mode = #tpu.pipeline_mode<synchronous>, transform_indices = @transform_5, window_bounds = array<i64: 1, 32>}, {pipeline_mode = #tpu.pipeline_mode<synchronous>, transform_indices = @transform_6, window_bounds = array<i64: 1, 1>}, {transform_indices = @transform_7, window_bounds = array<i64: 1, 128>}]} {
    %c0 = arith.constant 0 : index
    %c0_0 = arith.constant 0 : index
    %0 = vector.load %arg1[%c0, %c0_0] : memref<4x128xf32, #tpu.memory_space<vmem>>, vector<4x128xf32>
    %1 = arith.truncf %0 : vector<4x128xf32> to vector<4x128xbf16>
    %c0_1 = arith.constant 0 : index
    %c0_2 = arith.constant 0 : index
    %2 = vector.load %arg2[%c0_1, %c0_2] : memref<32x4xbf16, #tpu.memory_space<vmem>>, vector<32x4xbf16>
    %cst = arith.constant dense<0.000000e+00> : vector<32x128xf32>
    %3 = tpu.matmul %2, %1, %cst {dimension_numbers = #tpu.dot_dimension_numbers<[1], [0], [0], [1], [0, 0, 1, 1], [], []>} : vector<32x4xbf16>, vector<4x128xbf16>, vector<32x128xf32> -> vector<32x128xf32>
    %c0_3 = arith.constant 0 : index
    %c0_4 = arith.constant 0 : index
    %4 = vector.load %arg3[%c0_3, %c0_4] : memref<32x1xf32, #tpu.memory_space<vmem>>, vector<32x1xf32>
    %5 = vector.broadcast %4 : vector<32x1xf32> to vector<32x128xf32>
    %6 = arith.addf %3, %5 : vector<32x128xf32>
    %cst_5 = arith.constant 0.000000e+00 : f32
    %7 = vector.broadcast %cst_5 : f32 to vector<32x128xf32>
    %8 = arith.maximumf %6, %7 : vector<32x128xf32>
    %c0_6 = arith.constant 0 : index
    %c0_7 = arith.constant 0 : index
    %9 = vector.load %arg4[%c0_6, %c0_7] : memref<32x32xbf16, #tpu.memory_space<vmem>>, vector<32x32xbf16>
    %10 = arith.truncf %8 : vector<32x128xf32> to vector<32x128xbf16>
    %cst_8 = arith.constant dense<0.000000e+00> : vector<32x128xf32>
    %11 = tpu.matmul %9, %10, %cst_8 {dimension_numbers = #tpu.dot_dimension_numbers<[1], [0], [0], [1], [0, 0, 1, 1], [], []>} : vector<32x32xbf16>, vector<32x128xbf16>, vector<32x128xf32> -> vector<32x128xf32>
    %c0_9 = arith.constant 0 : index
    %c0_10 = arith.constant 0 : index
    %12 = vector.load %arg5[%c0_9, %c0_10] : memref<32x1xf32, #tpu.memory_space<vmem>>, vector<32x1xf32>
    %13 = vector.broadcast %12 : vector<32x1xf32> to vector<32x128xf32>
    %14 = arith.addf %11, %13 : vector<32x128xf32>
    %cst_11 = arith.constant 0.000000e+00 : f32
    %15 = vector.broadcast %cst_11 : f32 to vector<32x128xf32>
    %16 = arith.maximumf %14, %15 : vector<32x128xf32>
    %c0_12 = arith.constant 0 : index
    %c0_13 = arith.constant 0 : index
    %17 = vector.load %arg6[%c0_12, %c0_13] : memref<1x32xbf16, #tpu.memory_space<vmem>>, vector<1x32xbf16>
    %18 = arith.truncf %16 : vector<32x128xf32> to vector<32x128xbf16>
    %cst_14 = arith.constant dense<0.000000e+00> : vector<1x128xf32>
    %19 = tpu.matmul %17, %18, %cst_14 {dimension_numbers = #tpu.dot_dimension_numbers<[1], [0], [0], [1], [0, 0, 1, 1], [], []>} : vector<1x32xbf16>, vector<32x128xbf16>, vector<1x128xf32> -> vector<1x128xf32>
    %c0_15 = arith.constant 0 : index
    %c0_16 = arith.constant 0 : index
    %20 = vector.load %arg7[%c0_15, %c0_16] : memref<1x1xf32, #tpu.memory_space<vmem>>, vector<1x1xf32>
    %21 = vector.broadcast %20 : vector<1x1xf32> to vector<1x128xf32>
    %22 = arith.addf %19, %21 : vector<1x128xf32>
    %c0_17 = arith.constant 0 : index
    %c0_18 = arith.constant 0 : index
    %23 = vector.load %arg8[%c0_17, %c0_18] : memref<1x128xf32, #tpu.memory_space<vmem>>, vector<1x128xf32>
    tpu.vector_store %arg8[%c0_17, %c0_18], %22 {strides = array<i32>} : memref<1x128xf32, #tpu.memory_space<vmem>>, vector<1x128xf32>,
    return
  }
  func.func @transform_0(%arg0: i32) -> (i32, i32) {
    %c0_i32 = arith.constant 0 : i32
    %c0_i32_0 = arith.constant 0 : i32
    return %c0_i32, %arg0 : i32, i32
  }
  func.func @transform_1(%arg0: i32) -> (i32, i32) {
    %c0_i32 = arith.constant 0 : i32
    %c0_i32_0 = arith.constant 0 : i32
    %c0_i32_1 = arith.constant 0 : i32
    return %c0_i32, %c0_i32_0 : i32, i32
  }
  func.func @transform_2(%arg0: i32) -> (i32, i32) {
    %c0_i32 = arith.constant 0 : i32
    %c0_i32_0 = arith.constant 0 : i32
    %c0_i32_1 = arith.constant 0 : i32
    return %c0_i32, %c0_i32_0 : i32, i32
  }
  func.func @transform_3(%arg0: i32) -> (i32, i32) {
    %c0_i32 = arith.constant 0 : i32
    %c0_i32_0 = arith.constant 0 : i32
    %c0_i32_1 = arith.constant 0 : i32
    return %c0_i32, %c0_i32_0 : i32, i32
  }
  func.func @transform_4(%arg0: i32) -> (i32, i32) {
    %c0_i32 = arith.constant 0 : i32
    %c0_i32_0 = arith.constant 0 : i32
    %c0_i32_1 = arith.constant 0 : i32
    return %c0_i32, %c0_i32_0 : i32, i32
  }
  func.func @transform_5(%arg0: i32) -> (i32, i32) {
    %c0_i32 = arith.constant 0 : i32
    %c0_i32_0 = arith.constant 0 : i32
    %c0_i32_1 = arith.constant 0 : i32
    return %c0_i32, %c0_i32_0 : i32, i32
  }
  func.func @transform_6(%arg0: i32) -> (i32, i32) {
    %c0_i32 = arith.constant 0 : i32
    %c0_i32_0 = arith.constant 0 : i32
    %c0_i32_1 = arith.constant 0 : i32
    return %c0_i32, %c0_i32_0 : i32, i32
  }
  func.func @transform_7(%arg0: i32) -> (i32, i32) {
    %c0_i32 = arith.constant 0 : i32
    %c0_i32_0 = arith.constant 0 : i32
    return %c0_i32, %arg0 : i32, i32
  }
}

</mosaic_0001>

<bundles_post_ra>
// kernel: tpu_custom_call.1
= control target key start
LH: loop header
LB: loop body
LE: loop exit
PB: predicated region body
PF: predicated region fallthrough
CT: control target
= control target key end

     0   :  { %s485_s0 = inlined_call_operand.vmem [shape: f32[4,8], index: 0, kind: input, shape index: {}]   ;;  %s486_s1 = inlined_call_operand.vmem [shape: bf16[32,4], index: 1, kind: input, shape index: {}]   ;;  %s487_s2 = inlined_call_operand.vmem [shape: f32[32,1], index: 2, kind: input, shape index: {}]   ;;  %s488_s3 = inlined_call_operand.vmem [shape: bf16[32,32], index: 3, kind: input, shape index: {}]   ;;  %s489_s4 = inlined_call_operand.vmem [shape: f32[32,1], index: 4, kind: input, shape index: {}]   ;;  %s490_s5 = inlined_call_operand.vmem [shape: bf16[1,32], index: 5, kind: input, shape index: {}]   ;;  %s491_s6 = inlined_call_operand.<no memory space> [shape: f32[1,1], index: 6, kind: input, shape index: {}]   ;;  %s492_s7 = inlined_call_operand.hbm [shape: f32[1,128], index: 7, kind: output, shape index: {}]  }
   0x1   :  { %v12_v0 = vstv %s491_s6 }
   0x2   :  { %13 = vst [vmem:[#allocation2] sm:$0x1] %v12_v0 }
   0x3   :  { %v30_v1 = vld [vmem:[%s485_s0] sm:$0xf]  ;;  %vm77_vm0 = vcmask 1041408   ;;  %vm70_vm1 = vcmask 31744   ;;  %v354_v6 = vld [vmem:[%s486_s1 + $0x8] sm:$0xff]   ;;  %v381_v7 = vmov 0  }
   0x4   :  { %v353_v2 = vld [vmem:[%s486_s1] sm:$0xff]   ;;  %v31_v3 = vpack.c.bf16 %v30_v1, %v30_v1  ;;  %351 = vset.pattern.permute.xlu0 %v381_v7  ;;  %v38_v8 = vld [vmem:[%s487_s2 + $0x10] sm:$0xff]  ;;  %v37_v9 = vld [vmem:[%s487_s2 + $0x8] sm:$0xff]  ;;  %352 = vset.pattern.permute.xlu1 %v381_v7 }
   0x5   :  { %326 = vmatprep.mubr.msk.bf16.mxu0 %vm70_vm1, %v353_v2  ;;  %v36_v4 = vld [vmem:[%s487_s2] sm:$0xff]  ;;  %52 = vperm.xlu1 %352, %v38_v8  }
   0x6   :  { %346 = vmatprep.subr.msk.bf16.mxu0 %vm77_vm0, %v31_v3  ;;  %v79_v5 = vsel %vm77_vm0, %v31_v3, 0  ;;  %42 = vperm.xlu0 %351, %v36_v4  }
   0x7   :  { %325 = vmatpush3.bf16.msra.mxu0 %v79_v5 }
   0x8   :  { %14 = vsyncpa [#allocation4], 0  ;;  %v39_v10 = vld [vmem:[%s487_s2 + $0x18] sm:$0xff]  ;;  %v140_v11 = vld [vmem:[%s489_s4] sm:$0xff]  ;;  %vm174_vm2 = vcmask 261120   ;;  %v382_v36 = vmov 0.0   ;;  %v243_v56 = vlaneseq }
   0x9   :  { %57 = vperm.xlu1 %352, %v39_v10   ;;  %v141_v12 = vld [vmem:[%s489_s4 + $0x8] sm:$0xff]  ;;  %v142_v13 = vld [vmem:[%s489_s4 + $0x10] sm:$0xff]  ;;  %v143_v14 = vld [vmem:[%s489_s4 + $0x18] sm:$0xff]  ;;  %338 = vmatprep.subr.bf16.mxu0 %v382_v36  ;;  %vm383_vm3 = vmmov 0   ;;  %s384_s25 = smov [#allocation3]  }
   0xa   :  { %327 = vmatmul.mubr.msk.bf16.vlgmr.msra.gmra.mrb[0].mxu0 %vm70_vm1, %v354_v6  ;;  %47 = vperm.xlu0 %351, %v37_v9   ;;  %v237_v15 = vld [vmem:[#allocation2] sm:$0x1]  ;;  %v356_v35 = vld [vmem:[%s488_s3 + $0x8] sm:$0xff]   ;;  %v244_v57 = vshrl.u32 %v243_v56, 7  ;;  %s297_s26 = sshll.u32 %s384_s25, 4  ;;  %s298_s26 = int_to_ptr.vmem [resolvable:$true] %s297_s26 }
   0xb   :  { %v355_v16 = vld [vmem:[%s488_s3] sm:$0xff]   ;;  %342 = vmatprep.mubr.msk.bf16.mxu0 %vm383_vm3, %v382_v36  ;;  %s357_s27 = scalar_lea.vmem %s298_s26, 16  ;;  %s361_s28 = scalar_lea.vmem %s298_s26, 32 }
   0xc   :  { %334 = vmatprep.mubr.msk.bf16.mxu1 %vm174_vm2, %v355_v16  ;;  %v234_v55 = vld [vmem:[%s490_s5] sm:$0x1]  ;;  %v245_v58 = vsub.s32 0, %v244_v57  ;;  %p358_p0 = scmp.ne.s32.totalorder %s298_s26, %s357_s27  ;;  %p362_p1 = scmp.lt.s32.totalorder %s298_s26, %s298_s26 }
   0xd   :  { %151 = vperm.xlu1 %352, %v141_v12   ;;  %p363_p2 = scmp.lt.s32.totalorder %s361_s28, %s357_s27 }
   0xe   :  { %146 = vperm.xlu0 %351, %v140_v11  }
   0xf   :  { %p364_p3 = por %p363_p2, %p362_p1 }
  0x11   :  { %161 = vperm.xlu1 %352, %v143_v14   ;;  %p365_p4 = pnand %p364_p3, %p358_p0 }
  0x12   :  { %156 = vperm.xlu0 %351, %v142_v13  }
  0x16   :  { %240 = vperm.xlu0 %351, %v237_v15  }
  0x84   :  { %v53_v17 = vpop.permute.xlu1 %52 }
  0x85   :  { %v43_v18 = vpop.permute.xlu0 %42 }
  0x88   :  { %v58_v22 = vpop.permute.xlu1 %57 }
  0x89   :  { %v48_v25 = vpop.permute.xlu0 %47 }
  0x8c   :  { %v152_v38 = vpop.permute.xlu1 %151 }
  0x8d   :  { %v147_v37 = vpop.permute.xlu0 %146 }
  0x90   :  { %v162_v43 = vpop.permute.xlu1 %161 }
  0x91   :  { %v157_v39 = vpop.permute.xlu0 %156 }
  0x95   :  { %v241_v59 = vpop.permute.xlu0 %240 }
  0x96   :  { %v246_v60 = vrot.slane %v241_v59, %v245_v58 }
  0xdd   :  { %v328_v19 = vpop.f32.mrb[0].mxu0 }
  0xde   :  { %v124_v20 = vadd.f32 %v328_v19, %v53_v17  ;;  %v115_v21 = vpop.f32.mrb[1].mxu0 }
  0xdf   :  { %v116_v23 = vadd.f32 %v115_v21, %v43_v18  ;;  %v329_v24 = vpop.f32.mrb[2].mxu0 }
  0xe0   :  { %v127_v26 = vadd.f32 %v329_v24, %v58_v22  ;;  %v118_v27 = vpop.f32.mrb[3].mxu0  ;;  %v132_v29 = vmax.f32 %v124_v20, 0.0 }
  0xe1   :  { %v119_v28 = vadd.f32 %v118_v27, %v48_v25  ;;  %v130_v31 = vmax.f32 %v116_v23, 0.0 }
  0xe2   :  { %v133_v30 = vmax.f32 %v127_v26, 0.0 }
  0xe3   :  { %v131_v32 = vmax.f32 %v119_v28, 0.0 }
  0xe4   :  { %v139_v33 = vpack.c.bf16 %v133_v30, %v132_v29 }
  0xe5   :  { %v138_v34 = vpack.c.bf16 %v131_v32, %v130_v31 }
  0xe7   :  { %330 = vmatprep.subr.bf16.mxu1 %v138_v34 }
  0xe8   :  { %331 = vmatpush3.bf16.msra.mxu1 %v138_v34 }
  0xe9   :  { %332 = vmatprep.subr.bf16.mxu1 %v139_v33 }
  0xec   :  { %333 = vmatpush3.bf16.msra.mxu1 %v139_v33 }
  0xef   :  { %335 = vmatmul.mubr.msk.bf16.vlgmr.msra.gmra.mrb[0].mxu1 %vm174_vm2, %v356_v35 }
 0x1c2   :  { %v336_v40 = vpop.f32.mrb[0].mxu1 }
 0x1c3   :  { %v224_v41 = vadd.f32 %v336_v40, %v157_v39  ;;  %v215_v42 = vpop.f32.mrb[1].mxu1 }
 0x1c4   :  { %v216_v44 = vadd.f32 %v215_v42, %v147_v37  ;;  %v337_v45 = vpop.f32.mrb[2].mxu1 }
 0x1c5   :  { %v227_v46 = vadd.f32 %v337_v45, %v162_v43  ;;  %v218_v47 = vpop.f32.mrb[3].mxu1  ;;  %v232_v49 = vmax.f32 %v224_v41, 0.0 }
 0x1c6   :  { %v219_v48 = vadd.f32 %v218_v47, %v152_v38  ;;  %v230_v51 = vmax.f32 %v216_v44, 0.0 }
 0x1c7   :  { %v233_v50 = vmax.f32 %v227_v46, 0.0 }
 0x1c8   :  { %v231_v52 = vmax.f32 %v219_v48, 0.0 }
 0x1c9   :  { %v236_v53 = vpack.c.bf16 %v233_v50, %v232_v49 }
 0x1ca   :  { %v235_v54 = vpack.c.bf16 %v231_v52, %v230_v51 }
 0x1cc   :  { %339 = vmatpush3.bf16.msra.mxu0 %v235_v54 }
 0x1cd   :  { %340 = vmatprep.subr.bf16.mxu0 %v382_v36 }
 0x1d0   :  { %341 = vmatpush3.bf16.msra.mxu0 %v236_v53 }
 0x1d3   :  { %343 = vmatmul.mubr.msk.bf16.vlgmr.msra.gmra.mrb[4].mxu0 %vm174_vm2, %v234_v55 }
 0x2a6   :  { %v284_v61 = vpop.f32.mrb[4].mxu0 }
 0x2a7   :  { %v285_v62 = vadd.f32 %v284_v61, %v246_v60  ;;  %v344_v63 = vpop.f32.mrb[5].mxu0 }
 0x2a8   :  { %v287_v0 = vpop.f32.mrb[6].mxu0 }
 0x2a9   :  { %290 = vst [vmem:[#allocation3] sm:$0x1] %v285_v62  ;;  %v345_v1 = vpop.f32.mrb[7].mxu0 }
 0x2aa   :  { %368 = shalt.err (!%p365_p4)
}
 0x2ab   :  { %s369_s30 = scalar_lea.hbm %s492_s7, 16 }
 0x2ac   :  { %p370_p5 = scmp.ne.s32.totalorder %s492_s7, %s369_s30  ;;  %p373_p6 = scmp.lt.u32.totalorder %s369_s30, %s492_s7 }
 0x2ae   :  { %p375_p7 = pnand %p373_p6, %p370_p5 }
 0x2b0   :  { %378 = shalt.err (!%p375_p7)
}
 0x2b1   :  { %300 = dma.vmem_to_hbm [thread:$0]  %s298_s26, 16, %s492_s7, [#allocation4]  }
 0x2b2   :  { %379 = dma.done.wait [#allocation4], 16  }
 0x2b3   :  { %380 = vsyncadd [#allocation4], 4294967280 }
 0x2b4   :  { %304 = vsyncpa [#allocation4], 1 }

</bundles_post_ra>
